<compile_context>
chip_gen: v7x
topology: tpu7x:2x2x1
jax: 0.10.0
libtpu: 0.0.40
codegen_flags: <defaults>
</compile_context>

<pallas_src>
import functools

import jax
import jax.numpy as jnp
from jax.experimental import pallas as pl
from jax.experimental.pallas import tpu as pltpu


def _round_up(x, m):
    return ((x + m - 1) // m) * m


# ----------------------------- Pallas kernel -------------------------------

def _sa_mlp_maxpool_kernel(x_ref, w1_ref, b1_ref, w2_ref, b2_ref, o_ref, *,
                           nsample):
    # x: (tile_p * nsample, CIN_PAD) bf16 — rows = grouped samples, lanes = channels.
    x = x_ref[...]
    # Layer 1: one 2D MXU matmul over the whole row slab (fills the MXU M dim),
    # folded-BN bias add, ReLU.  Accumulate in f32, feed layer 2 in bf16.
    h = jnp.dot(x, w1_ref[...], preferred_element_type=jnp.float32) + b1_ref[...]
    h = jnp.maximum(h, 0.0).astype(jnp.bfloat16)
    # Layer 2.
    y = jnp.dot(h, w2_ref[...], preferred_element_type=jnp.float32) + b2_ref[...]
    y = jnp.maximum(y, 0.0)
    rows, cp = y.shape
    # F.max_pool2d(kernel_size=[1, nsample]).squeeze(-1): max over the sample axis.
    o_ref[...] = jnp.max(y.reshape(rows // nsample, nsample, cp), axis=1)


def _pick_tile_p(n_groups, nsample, cin_pad, cout_pad, *, target_rows=2048,
                 vmem_budget=24 * 1024 * 1024):
    """Largest divisor of n_groups with tile_p*nsample <= target_rows that keeps
    the double-buffered input/output tiles inside a conservative VMEM budget
    (safe on v7x's 64 MiB physical VMEM as well as v5e/v6e)."""
    def fits(t):
        rows = t * nsample
        need = 2 * rows * cin_pad * 2 + 2 * t * cout_pad * 4   # bf16 in, f32 out, x2 buffers
        return need <= vmem_budget

    best = None
    for t in range(1, n_groups + 1):
        if n_groups % t:
            continue
        # keep sublane alignment of both the input slab and the output tile
        if not (t == n_groups or (t % 8 == 0 and (t * nsample) % 16 == 0)):
            continue
        if t * nsample <= target_rows and fits(t):
            best = t
        elif best is None:
            best = t
    return best if best is not None else n_groups


def shared_mlp_maxpool(flat, w1, b1, w2, b2, *, n_groups, nsample):
    """flat: (n_groups*nsample, CIN_PAD) bf16 -> pooled (n_groups, COUT_PAD) f32."""
    rows, cin_pad = flat.shape
    assert rows == n_groups * nsample
    h_pad = w1.shape[1]
    cout_pad = w2.shape[1]

    tile_p = _pick_tile_p(n_groups, nsample, cin_pad, cout_pad)
    tile_rows = tile_p * nsample
    grid = (n_groups // tile_p,)

    kernel = functools.partial(_sa_mlp_maxpool_kernel, nsample=nsample)
    return pl.pallas_call(
        kernel,
        out_shape=jax.ShapeDtypeStruct((n_groups, cout_pad), jnp.float32),
        grid_spec=pltpu.PrefetchScalarGridSpec(
            num_scalar_prefetch=0,
            grid=grid,
            in_specs=[
                pl.BlockSpec((tile_rows, cin_pad), lambda i: (i, 0)),
                pl.BlockSpec((cin_pad, h_pad), lambda i: (0, 0)),
                pl.BlockSpec((1, h_pad), lambda i: (0, 0)),
                pl.BlockSpec((h_pad, cout_pad), lambda i: (0, 0)),
                pl.BlockSpec((1, cout_pad), lambda i: (0, 0)),
            ],
            out_specs=pl.BlockSpec((tile_p, cout_pad), lambda i: (i, 0)),
        ),
        compiler_params=pltpu.CompilerParams(
            dimension_semantics=("parallel",),
            vmem_limit_bytes=32 * 1024 * 1024),
    )(flat, w1, b1, w2, b2)


# --------------------------- plain-JAX glue ops -----------------------------
# TODO(synk): FPS / ball-query are sequential & data-dependent gathers; kept
# as JAX glue rather than forced into a Pallas kernel.

def furthest_point_sample(xyz, npoint):
    """xyz: (B, N, 3) -> (B, npoint) int32. Matches CUDA FPS (starts at idx 0)."""
    B, N, _ = xyz.shape

    def fps_one(pts):
        dist = jnp.full((N,), jnp.inf, jnp.float32)
        idxs = jnp.zeros((npoint,), jnp.int32)

        def body(i, carry):
            dist, last, idxs = carry
            d = jnp.sum((pts - pts[last]) ** 2, axis=-1)
            dist = jnp.minimum(dist, d)
            nxt = jnp.argmax(dist).astype(jnp.int32)
            idxs = idxs.at[i].set(nxt)
            return dist, nxt, idxs

        _, _, idxs = jax.lax.fori_loop(1, npoint, body,
                                       (dist, jnp.int32(0), idxs))
        return idxs

    return jax.vmap(fps_one)(xyz)


def ball_query(radius, nsample, xyz, new_xyz):
    """xyz: (B,N,3), new_xyz: (B,S,3) -> (B,S,nsample) int32.
    First `nsample` in-radius indices in point order; short balls repeat the
    first in-radius index; empty balls give all-zero indices — same as the
    zero-initialized CUDA ball_query output."""
    B, N, _ = xyz.shape
    d2 = jnp.sum((new_xyz[:, :, None, :] - xyz[:, None, :, :]) ** 2, -1)  # (B,S,N)
    mask = d2 < radius * radius
    arange = jnp.arange(N)
    key = jnp.where(mask, arange, N + arange)        # in-ball indices sort first
    order = jnp.argsort(key, axis=-1)
    idx = order[..., :nsample]
    cnt = jnp.sum(mask, axis=-1, keepdims=True)      # (B,S,1)
    first = idx[..., :1]                             # = 0 when the ball is empty
    k = jnp.arange(nsample)[None, None, :]
    idx = jnp.where(k < cnt, idx, first)
    return idx.astype(jnp.int32)


def _gather_points(points, idx):
    """points: (B, N, D), idx: (B, ...) -> (B, ..., D)."""
    return jax.vmap(lambda p, i: p[i])(points, idx)


# ------------------------ parameter folding / padding -----------------------

def pad_mlp_params(w1, b1, w2, b2):
    """w1:(Cin,H) w2:(H,Cout) with BN already folded; returns zero-padded
    bf16 weights / f32 biases (Cin->mult of 8, H/Cout->mult of 128) so the
    kernel's matmuls and output stores are lane-dense."""
    cin, h = w1.shape
    _, cout = w2.shape
    cin_pad = max(8, _round_up(cin, 8))
    h_pad = _round_up(h, 128)
    cout_pad = _round_up(cout, 128)
    w1p = jnp.zeros((cin_pad, h_pad), jnp.bfloat16).at[:cin, :h].set(
        w1.astype(jnp.bfloat16))
    b1p = jnp.zeros((1, h_pad), jnp.float32).at[0, :h].set(b1.astype(jnp.float32))
    w2p = jnp.zeros((h_pad, cout_pad), jnp.bfloat16).at[:h, :cout].set(
        w2.astype(jnp.bfloat16))
    b2p = jnp.zeros((1, cout_pad), jnp.float32).at[0, :cout].set(b2.astype(jnp.float32))
    return dict(w1=w1p, b1=b1p, w2=w2p, b2=b2p, cin=cin, cout=cout)


# ------------------------- SA module forward pass ---------------------------

def pointnet_sa_module_votes_forward(xyz, features, *, npoint, radius, nsample,
                                     mlp_params, inds=None, use_xyz=True,
                                     normalize_xyz=False):
    """Eval-mode forward of PointnetSAModuleVotes (pooling='max').
    xyz: (B, N, 3) f32; features: (B, C, N) f32 or None.
    Returns (new_xyz (B, npoint, 3), new_features (B, Cout, npoint), inds (B, npoint)).
    """
    # TODO(synk): pooling modes 'avg'/'rbf' and ret_unique_cnt are not implemented.
    B, N, _ = xyz.shape
    if inds is None:
        inds = furthest_point_sample(xyz, npoint)                 # (B, npoint)
    new_xyz = _gather_points(xyz, inds)                           # (B, npoint, 3)

    idx = ball_query(radius, nsample, xyz, new_xyz)               # (B, npoint, ns)
    grouped_xyz = _gather_points(xyz, idx) - new_xyz[:, :, None, :]
    if normalize_xyz:
        grouped_xyz = grouped_xyz / radius

    parts = []
    if use_xyz:
        parts.append(grouped_xyz)
    if features is not None:
        feats_t = jnp.transpose(features, (0, 2, 1))              # (B, N, C)
        parts.append(_gather_points(feats_t, idx))
    grouped = jnp.concatenate(parts, axis=-1)                     # (B,np,ns,Cin)

    # TODO(synk): the ball-query gather is still materialized in HBM; fusing it
    # into the kernel (scalar-prefetch idx + in-kernel gather) would remove one
    # full HBM round trip of the grouped tensor.

    Bp, np_, ns, cin = grouped.shape
    assert cin == mlp_params["cin"]
    cin_pad = mlp_params["w1"].shape[0]
    cout = mlp_params["cout"]

    flat = grouped.reshape(Bp * np_ * ns, cin).astype(jnp.bfloat16)
    if cin_pad > cin:
        flat = jnp.pad(flat, ((0, 0), (0, cin_pad - cin)))

    pooled = shared_mlp_maxpool(flat, mlp_params["w1"], mlp_params["b1"],
                                mlp_params["w2"], mlp_params["b2"],
                                n_groups=Bp * np_, nsample=ns)    # (B*np, Cout_pad)
    pooled = pooled[:, :cout].reshape(Bp, np_, cout)
    new_features = jnp.transpose(pooled, (0, 2, 1))               # (B, Cout, np)
    return new_xyz, new_features, inds


# --------------------------------- main -------------------------------------

if __name__ == "__main__":
    key = jax.random.PRNGKey(0)
    B, N, C = 2, 64, 4
    npoint, radius, nsample = 16, 0.4, 16
    mlp = [C, 16, 32]                  # module mlp spec (before use_xyz adds +3)
    cin = mlp[0] + 3                   # use_xyz=True
    h, cout = mlp[1], mlp[2]

    keys = jax.random.split(key, 8)
    xyz = jax.random.uniform(keys[0], (B, N, 3), jnp.float32)
    features = 0.1 * jax.random.normal(keys[1], (B, C, N), jnp.float32)

    # 1x1 Conv2d weights + eval-mode BatchNorm folded (running_mean=0, var=1):
    #   y = gamma * (W x) + beta  ->  W_eff = W * gamma, b_eff = beta
    w1 = 0.1 * jax.random.normal(keys[2], (cin, h), jnp.float32)
    w2 = 0.1 * jax.random.normal(keys[3], (h, cout), jnp.float32)
    g1 = 1.0 + 0.01 * jax.random.normal(keys[4], (h,), jnp.float32)
    g2 = 1.0 + 0.01 * jax.random.normal(keys[5], (cout,), jnp.float32)
    b1 = 0.01 * jax.random.normal(keys[6], (h,), jnp.float32)
    b2 = 0.01 * jax.random.normal(keys[7], (cout,), jnp.float32)
    params = pad_mlp_params(w1 * g1[None, :], b1, w2 * g2[None, :], b2)

    new_xyz, new_features, inds = pointnet_sa_module_votes_forward(
        xyz, features, npoint=npoint, radius=radius, nsample=nsample,
        mlp_params=params)
    jax.block_until_ready((new_xyz, new_features, inds))

    assert new_xyz.shape == (B, npoint, 3)
    assert new_features.shape == (B, cout, npoint)
    assert inds.shape == (B, npoint)
    assert jnp.all(jnp.isfinite(new_xyz)) and jnp.all(jnp.isfinite(new_features))
    print("KERNEL_OK")
</pallas_src>

<mosaic_0001>
module attributes {stable_mosaic.version = 11 : i64} {
  func.func @_sa_mlp_maxpool_kernel(%arg0: i32, %arg1: memref<512x8xbf16, #tpu.memory_space<vmem>>, %arg2: memref<8x128xbf16, #tpu.memory_space<vmem>>, %arg3: memref<1x128xf32, #tpu.memory_space<vmem>>, %arg4: memref<128x128xbf16, #tpu.memory_space<vmem>>, %arg5: memref<1x128xf32, #tpu.memory_space<vmem>>, %arg6: memref<32x128xf32, #tpu.memory_space<vmem>>) attributes {dimension_semantics = [#tpu.dimension_semantics<parallel>], iteration_bounds = array<i64: 1>, scalar_prefetch = 0 : i64, scratch_operands = 0 : i64, tpu.core_type = #tpu.core_type<tc>, window_params = [{transform_indices = @transform_0, window_bounds = array<i64: 512, 8>}, {pipeline_mode = #tpu.pipeline_mode<synchronous>, transform_indices = @transform_1, window_bounds = array<i64: 8, 128>}, {pipeline_mode = #tpu.pipeline_mode<synchronous>, transform_indices = @transform_2, window_bounds = array<i64: 1, 128>}, {pipeline_mode = #tpu.pipeline_mode<synchronous>, transform_indices = @transform_3, window_bounds = array<i64: 128, 128>}, {pipeline_mode = #tpu.pipeline_mode<synchronous>, transform_indices = @transform_4, window_bounds = array<i64: 1, 128>}, {transform_indices = @transform_5, window_bounds = array<i64: 32, 128>}]} {
    %c0 = arith.constant 0 : index
    %c0_0 = arith.constant 0 : index
    %0 = vector.load %arg1[%c0, %c0_0] : memref<512x8xbf16, #tpu.memory_space<vmem>>, vector<512x8xbf16>
    %c0_1 = arith.constant 0 : index
    %c0_2 = arith.constant 0 : index
    %1 = vector.load %arg2[%c0_1, %c0_2] : memref<8x128xbf16, #tpu.memory_space<vmem>>, vector<8x128xbf16>
    %cst = arith.constant dense<0.000000e+00> : vector<512x128xf32>
    %2 = tpu.matmul %0, %1, %cst {dimension_numbers = #tpu.dot_dimension_numbers<[1], [0], [0], [1], [0, 0, 1, 1], [], []>} : vector<512x8xbf16>, vector<8x128xbf16>, vector<512x128xf32> -> vector<512x128xf32>
    %c0_3 = arith.constant 0 : index
    %c0_4 = arith.constant 0 : index
    %3 = vector.load %arg3[%c0_3, %c0_4] : memref<1x128xf32, #tpu.memory_space<vmem>>, vector<1x128xf32>
    %4 = vector.broadcast %3 : vector<1x128xf32> to vector<512x128xf32>
    %5 = arith.addf %2, %4 : vector<512x128xf32>
    %cst_5 = arith.constant 0.000000e+00 : f32
    %6 = vector.broadcast %cst_5 : f32 to vector<512x128xf32>
    %7 = arith.maximumf %5, %6 : vector<512x128xf32>
    %8 = arith.truncf %7 : vector<512x128xf32> to vector<512x128xbf16>
    %c0_6 = arith.constant 0 : index
    %c0_7 = arith.constant 0 : index
    %9 = vector.load %arg4[%c0_6, %c0_7] : memref<128x128xbf16, #tpu.memory_space<vmem>>, vector<128x128xbf16>
    %cst_8 = arith.constant dense<0.000000e+00> : vector<512x128xf32>
    %10 = tpu.matmul %8, %9, %cst_8 {dimension_numbers = #tpu.dot_dimension_numbers<[1], [0], [0], [1], [0, 0, 1, 1], [], []>} : vector<512x128xbf16>, vector<128x128xbf16>, vector<512x128xf32> -> vector<512x128xf32>
    %c0_9 = arith.constant 0 : index
    %c0_10 = arith.constant 0 : index
    %11 = vector.load %arg5[%c0_9, %c0_10] : memref<1x128xf32, #tpu.memory_space<vmem>>, vector<1x128xf32>
    %12 = vector.broadcast %11 : vector<1x128xf32> to vector<512x128xf32>
    %13 = arith.addf %10, %12 : vector<512x128xf32>
    %cst_11 = arith.constant 0.000000e+00 : f32
    %14 = vector.broadcast %cst_11 : f32 to vector<512x128xf32>
    %15 = arith.maximumf %13, %14 : vector<512x128xf32>
    %16 = vector.shape_cast %15 : vector<512x128xf32> to vector<32x16x128xf32>
    %cst_12 = arith.constant dense<0xFF800000> : vector<32x128xf32>
    %17 = vector.multi_reduction <maximumf>, %16, %cst_12 [1] : vector<32x16x128xf32> to vector<32x128xf32>
    %c0_13 = arith.constant 0 : index
    %c0_14 = arith.constant 0 : index
    %18 = vector.load %arg6[%c0_13, %c0_14] : memref<32x128xf32, #tpu.memory_space<vmem>>, vector<32x128xf32>
    tpu.vector_store %arg6[%c0_13, %c0_14], %17 {strides = array<i32>} : memref<32x128xf32, #tpu.memory_space<vmem>>, vector<32x128xf32>,
    return
  }
  func.func @transform_0(%arg0: i32) -> (i32, i32) {
    %c0_i32 = arith.constant 0 : i32
    %c0_i32_0 = arith.constant 0 : i32
    return %arg0, %c0_i32 : i32, i32
  }
  func.func @transform_1(%arg0: i32) -> (i32, i32) {
    %c0_i32 = arith.constant 0 : i32
    %c0_i32_0 = arith.constant 0 : i32
    %c0_i32_1 = arith.constant 0 : i32
    return %c0_i32, %c0_i32_0 : i32, i32
  }
  func.func @transform_2(%arg0: i32) -> (i32, i32) {
    %c0_i32 = arith.constant 0 : i32
    %c0_i32_0 = arith.constant 0 : i32
    %c0_i32_1 = arith.constant 0 : i32
    return %c0_i32, %c0_i32_0 : i32, i32
  }
  func.func @transform_3(%arg0: i32) -> (i32, i32) {
    %c0_i32 = arith.constant 0 : i32
    %c0_i32_0 = arith.constant 0 : i32
    %c0_i32_1 = arith.constant 0 : i32
    return %c0_i32, %c0_i32_0 : i32, i32
  }
  func.func @transform_4(%arg0: i32) -> (i32, i32) {
    %c0_i32 = arith.constant 0 : i32
    %c0_i32_0 = arith.constant 0 : i32
    %c0_i32_1 = arith.constant 0 : i32
    return %c0_i32, %c0_i32_0 : i32, i32
  }
  func.func @transform_5(%arg0: i32) -> (i32, i32) {
    %c0_i32 = arith.constant 0 : i32
    %c0_i32_0 = arith.constant 0 : i32
    return %arg0, %c0_i32 : i32, i32
  }
}

</mosaic_0001>

<bundles_post_ra>
// kernel: tpu_custom_call.1
= control target key start
LH: loop header
LB: loop body
LE: loop exit
PB: predicated region body
PF: predicated region fallthrough
CT: control target
= control target key end

     0   :  { %vm351_vm0 = vcmask 1043456   ;;  %vm254_vm1 = vcmask 64512   ;;  %s2222_s0 = inlined_call_operand.vmem [shape: bf16[512,8], index: 0, kind: input, shape index: {}]   ;;  %s2223_s1 = inlined_call_operand.vmem [shape: bf16[8,128], index: 1, kind: input, shape index: {}]   ;;  %s2224_s2 = inlined_call_operand.vmem [shape: f32[1,128], index: 2, kind: input, shape index: {}]   ;;  %s2225_s3 = inlined_call_operand.vmem [shape: bf16[128,128], index: 3, kind: input, shape index: {}]   ;;  %s2226_s4 = inlined_call_operand.vmem [shape: f32[1,128], index: 4, kind: input, shape index: {}]   ;;  %s2227_s5 = inlined_call_operand.hbm [shape: f32[32,128], index: 5, kind: output, shape index: {}]  }
   0x1   :  { %v86_v0 = vld [vmem:[%s2223_s1] sm:$0xf]  ;;  %v1793_v3 = vld [vmem:[%s2222_s0 + $0x8] sm:$0xff]   ;;  %v1794_v4 = vld [vmem:[%s2222_s0 + $0x10] sm:$0xff]  }
   0x2   :  { %v1792_v1 = vld [vmem:[%s2222_s0] sm:$0xff]   ;;  %1788 = vmatprep.subr.msk.bf16.mxu0 %vm351_vm0, %v86_v0  ;;  %v353_v2 = vsel %vm351_vm0, %v86_v0, 0  ;;  %v1795_v5 = vld [vmem:[%s2222_s0 + $0x18] sm:$0xff]   ;;  %v1797_v7 = vld [vmem:[%s2222_s0 + $0x28] sm:$0xff]  }
   0x3   :  { %1627 = vmatpush3.bf16.msra.mxu0 %v353_v2  ;;  %1628 = vmatprep.mubr.msk.bf16.mxu0 %vm254_vm1, %v1792_v1  ;;  %v1796_v6 = vld [vmem:[%s2222_s0 + $0x20] sm:$0xff]   ;;  %v1798_v8 = vld [vmem:[%s2222_s0 + $0x30] sm:$0xff]   ;;  %v1799_v9 = vld [vmem:[%s2222_s0 + $0x38] sm:$0xff]  }
   0x4   :  { %v1800_v10 = vld [vmem:[%s2222_s0 + $0x40] sm:$0xff]   ;;  %v1801_v11 = vld [vmem:[%s2222_s0 + $0x48] sm:$0xff]   ;;  %v1802_v12 = vld [vmem:[%s2222_s0 + $0x50] sm:$0xff]  }
   0x5   :  { %v1824_v13 = vld [vmem:[%s2225_s3] sm:$0xff]   ;;  %v1825_v14 = vld [vmem:[%s2225_s3 + $0x8] sm:$0xff]   ;;  %v1826_v15 = vld [vmem:[%s2225_s3 + $0x10] sm:$0xff]  }
   0x6   :  { %1629 = vmatmul.mubr.msk.bf16.vlgmr.msra.gmra.mrb[0].mxu0 %vm254_vm1, %v1793_v3  ;;  %1692 = vmatprep.subr.bf16.mxu0 %v1824_v13 }
   0x7   :  { %1632 = vmatprep.mubr.msk.bf16.mxu0 %vm254_vm1, %v1794_v4  ;;  %1772 = vmatprep.subr.bf16.mxu1 %v1824_v13 }
   0x8   :  { %1693 = vmatpush3.bf16.msra.mxu0 %v1824_v13  ;;  %1780 = vmatpush3.bf16.msra.mxu1 %v1824_v13 }
   0x9   :  { %1694 = vmatprep.subr.bf16.mxu0 %v1825_v14  ;;  %1773 = vmatprep.subr.bf16.mxu1 %v1825_v14 }
   0xc   :  { %1695 = vmatpush3.bf16.msra.mxu0 %v1825_v14  ;;  %1781 = vmatpush3.bf16.msra.mxu1 %v1825_v14 }
   0xe   :  { %1633 = vmatmul.mubr.msk.bf16.gmra.mrb[4].mxu0 %vm254_vm1, %v1795_v5 }
   0xf   :  { %1636 = vmatprep.mubr.msk.bf16.mxu0 %vm254_vm1, %v1796_v6 }
  0x16   :  { %1637 = vmatmul.mubr.msk.bf16.gmra.mrb[8].mxu0 %vm254_vm1, %v1797_v7 }
  0x17   :  { %1640 = vmatprep.mubr.msk.bf16.mxu0 %vm254_vm1, %v1798_v8 }
  0x1e   :  { %1641 = vmatmul.mubr.msk.bf16.gmra.mrb[12].mxu0 %vm254_vm1, %v1799_v9 }
  0x1f   :  { %1644 = vmatprep.mubr.msk.bf16.mxu0 %vm254_vm1, %v1800_v10 }
  0x26   :  { %1645 = vmatmul.mubr.msk.bf16.gmra.mrb[16].mxu0 %vm254_vm1, %v1801_v11 }
  0x27   :  { %1648 = vmatprep.mubr.msk.bf16.mxu0 %vm254_vm1, %v1802_v12 }
  0x28   :  { %10 = vsyncpa [#allocation3], 0  ;;  %v1803_v16 = vld [vmem:[%s2222_s0 + $0x58] sm:$0xff]   ;;  %1696 = vmatprep.subr.bf16.mxu0 %v1826_v15  ;;  %1774 = vmatprep.subr.bf16.mxu1 %v1826_v15  ;;  %v1804_v18 = vld [vmem:[%s2222_s0 + $0x60] sm:$0xff]   ;;  %vm1420_vm2 = vcmask 1041409   ;;  %vm1422_vm3 = vcmask 1042434  }
  0x29   :  { %v1827_v17 = vld [vmem:[%s2225_s3 + $0x18] sm:$0xff]   ;;  %1697 = vmatpush3.bf16.msra.mxu0 %v1826_v15  ;;  %1782 = vmatpush3.bf16.msra.mxu1 %v1826_v15  ;;  %v1828_v19 = vld [vmem:[%s2225_s3 + $0x20] sm:$0xff]   ;;  %v1805_v20 = vld [vmem:[%s2222_s0 + $0x68] sm:$0xff]   ;;  %vm1424_vm4 = vcmask 1043459   ;;  %vm1426_vm5 = vcmask 1044484   ;;  %vm1428_vm6 = vcmask 1045509  }
  0x2a   :  { %1698 = vmatprep.subr.bf16.mxu0 %v1827_v17  ;;  %1775 = vmatprep.subr.bf16.mxu1 %v1827_v17  ;;  %v1829_v21 = vld [vmem:[%s2225_s3 + $0x28] sm:$0xff]   ;;  %v1806_v22 = vld [vmem:[%s2222_s0 + $0x70] sm:$0xff]   ;;  %v1807_v23 = vld [vmem:[%s2222_s0 + $0x78] sm:$0xff]   ;;  %vm1430_vm7 = vcmask 1046534   ;;  %vm1432_vm8 = vcmask 1047559  }
  0x2b   :  { %v1808_v24 = vld [vmem:[%s2222_s0 + $0x80] sm:$0xff]   ;;  %v1809_v25 = vld [vmem:[%s2222_s0 + $0x88] sm:$0xff]   ;;  %v1810_v26 = vld [vmem:[%s2222_s0 + $0x90] sm:$0xff]  }
  0x2c   :  { %v1811_v27 = vld [vmem:[%s2222_s0 + $0x98] sm:$0xff]   ;;  %v1812_v28 = vld [vmem:[%s2222_s0 + $0xa0] sm:$0xff]   ;;  %v1813_v29 = vld [vmem:[%s2222_s0 + $0xa8] sm:$0xff]  }
  0x2d   :  { %1699 = vmatpush3.bf16.msra.mxu0 %v1827_v17  ;;  %1783 = vmatpush3.bf16.msra.mxu1 %v1827_v17  ;;  %v1814_v30 = vld [vmem:[%s2222_s0 + $0xb0] sm:$0xff]   ;;  %v1815_v31 = vld [vmem:[%s2222_s0 + $0xb8] sm:$0xff]   ;;  %v1816_v33 = vld [vmem:[%s2222_s0 + $0xc0] sm:$0xff]  }
  0x2e   :  { %1649 = vmatmul.mubr.msk.bf16.gmra.mrb[20].mxu0 %vm254_vm1, %v1803_v16  ;;  %1700 = vmatprep.subr.bf16.mxu0 %v1828_v19  ;;  %v1830_v32 = vld [vmem:[%s2225_s3 + $0x30] sm:$0xff]   ;;  %v1831_v34 = vld [vmem:[%s2225_s3 + $0x38] sm:$0xff]   ;;  %v1817_v35 = vld [vmem:[%s2222_s0 + $0xc8] sm:$0xff]  }
  0x2f   :  { %1652 = vmatprep.mubr.msk.bf16.mxu0 %vm254_vm1, %v1804_v18  ;;  %1776 = vmatprep.subr.bf16.mxu1 %v1828_v19  ;;  %v1818_v36 = vld [vmem:[%s2222_s0 + $0xd0] sm:$0xff]   ;;  %v1819_v37 = vld [vmem:[%s2222_s0 + $0xd8] sm:$0xff]   ;;  %v1820_v38 = vld [vmem:[%s2222_s0 + $0xe0] sm:$0xff]  }
  0x30   :  { %v1821_v39 = vld [vmem:[%s2222_s0 + $0xe8] sm:$0xff]   ;;  %v1822_v40 = vld [vmem:[%s2222_s0 + $0xf0] sm:$0xff]   ;;  %v1823_v41 = vld [vmem:[%s2222_s0 + $0xf8] sm:$0xff]  }
  0x31   :  { %1701 = vmatpush3.bf16.msra.mxu0 %v1828_v19  ;;  %1784 = vmatpush3.bf16.msra.mxu1 %v1828_v19  ;;  %v2047_v42 = vld [vmem:[%s2224_s2] ss:$0 sm:$0xff] }
  0x32   :  { %1702 = vmatprep.subr.bf16.mxu0 %v1829_v21  ;;  %1777 = vmatprep.subr.bf16.mxu1 %v1829_v21 }
  0x35   :  { %1703 = vmatpush3.bf16.msra.mxu0 %v1829_v21  ;;  %1785 = vmatpush3.bf16.msra.mxu1 %v1829_v21 }
  0x36   :  { %1653 = vmatmul.mubr.msk.bf16.gmra.mrb[24].mxu0 %vm254_vm1, %v1805_v20  ;;  %1704 = vmatprep.subr.bf16.mxu0 %v1830_v32 }
  0x37   :  { %1656 = vmatprep.mubr.msk.bf16.mxu0 %vm254_vm1, %v1806_v22  ;;  %1778 = vmatprep.subr.bf16.mxu1 %v1830_v32 }
  0x39   :  { %1705 = vmatpush3.bf16.msra.mxu0 %v1830_v32  ;;  %1786 = vmatpush3.bf16.msra.mxu1 %v1830_v32 }
  0x3a   :  { %1706 = vmatprep.subr.bf16.mxu0 %v1831_v34  ;;  %1779 = vmatprep.subr.bf16.mxu1 %v1831_v34 }
  0x3d   :  { %1707 = vmatpush3.bf16.msra.mxu0 %v1831_v34  ;;  %1787 = vmatpush3.bf16.msra.mxu1 %v1831_v34 }
  0x3e   :  { %1657 = vmatmul.mubr.msk.bf16.gmra.mrb[28].mxu0 %vm254_vm1, %v1807_v23 }
  0x3f   :  { %1660 = vmatprep.mubr.msk.bf16.mxu0 %vm254_vm1, %v1808_v24 }
  0x46   :  { %1661 = vmatmul.mubr.msk.bf16.gmra.mrb[32].mxu0 %vm254_vm1, %v1809_v25 }
  0x47   :  { %1664 = vmatprep.mubr.msk.bf16.mxu0 %vm254_vm1, %v1810_v26 }
  0x4e   :  { %1665 = vmatmul.mubr.msk.bf16.gmra.mrb[36].mxu0 %vm254_vm1, %v1811_v27 }
  0x4f   :  { %1668 = vmatprep.mubr.msk.bf16.mxu0 %vm254_vm1, %v1812_v28 }
  0x56   :  { %1669 = vmatmul.mubr.msk.bf16.gmra.mrb[40].mxu0 %vm254_vm1, %v1813_v29 }
  0x57   :  { %1672 = vmatprep.mubr.msk.bf16.mxu0 %vm254_vm1, %v1814_v30 }
  0x5e   :  { %1673 = vmatmul.mubr.msk.bf16.gmra.mrb[44].mxu0 %vm254_vm1, %v1815_v31 }
  0x5f   :  { %1676 = vmatprep.mubr.msk.bf16.mxu0 %vm254_vm1, %v1816_v33 }
  0x66   :  { %1677 = vmatmul.mubr.msk.bf16.gmra.mrb[48].mxu0 %vm254_vm1, %v1817_v35 }
  0x67   :  { %1680 = vmatprep.mubr.msk.bf16.mxu0 %vm254_vm1, %v1818_v36 }
  0x6e   :  { %1681 = vmatmul.mubr.msk.bf16.gmra.mrb[52].mxu0 %vm254_vm1, %v1819_v37 }
  0x6f   :  { %1684 = vmatprep.mubr.msk.bf16.mxu0 %vm254_vm1, %v1820_v38 }
  0x76   :  { %1685 = vmatmul.mubr.msk.bf16.gmra.mrb[56].mxu0 %vm254_vm1, %v1821_v39 }
  0x77   :  { %1688 = vmatprep.mubr.msk.bf16.mxu0 %vm254_vm1, %v1822_v40 }
  0x7e   :  { %1689 = vmatmul.mubr.msk.bf16.gmra.mrb[60].mxu0 %vm254_vm1, %v1823_v41 }
  0xd9   :  { %v1630_v43 = vpop.f32.mrb[0].mxu0 }
  0xda   :  { %v398_v44 = vadd.f32 %v1630_v43, %v2047_v42  ;;  %v389_v45 = vpop.f32.mrb[1].mxu0 }
  0xdb   :  { %v390_v46 = vadd.f32 %v2047_v42, %v389_v45  ;;  %v1631_v47 = vpop.f32.mrb[2].mxu0 }
  0xdc   :  { %v401_v48 = vadd.f32 %v1631_v47, %v2047_v42  ;;  %v392_v49 = vpop.f32.mrb[3].mxu0  ;;  %v646_v51 = vmax.f32 %v398_v44, 0.0 }
  0xdd   :  { %v393_v50 = vadd.f32 %v2047_v42, %v392_v49  ;;  %v644_v53 = vmax.f32 %v390_v46, 0.0 }
  0xde   :  { %v647_v52 = vmax.f32 %v401_v48, 0.0 }
  0xdf   :  { %v645_v54 = vmax.f32 %v393_v50, 0.0 }
  0xe0   :  { %v709_v55 = vpack.c.bf16 %v647_v52, %v646_v51 }
  0xe1   :  { %v708_v56 = vpack.c.bf16 %v645_v54, %v644_v53  ;;  %v1634_v57 = vpop.f32.mrb[4].mxu0 }
  0xe2   :  { %v414_v58 = vadd.f32 %v1634_v57, %v2047_v42  ;;  %v405_v59 = vpop.f32.mrb[5].mxu0 }
  0xe3   :  { %v406_v60 = vadd.f32 %v2047_v42, %v405_v59  ;;  %v1635_v61 = vpop.f32.mrb[6].mxu0  ;;  %1708 = vmatprep.mubr.bf16.mxu0 %v708_v56 }
  0xe4   :  { %v417_v62 = vadd.f32 %v1635_v61, %v2047_v42  ;;  %v408_v63 = vpop.f32.mrb[7].mxu0  ;;  %1709 = vmatmul.mubr.bf16.vlgmr.msra.gmra.mrb[64].mxu0 %v709_v55  ;;  %v650_v1 = vmax.f32 %v414_v58, 0.0 }
  0xe5   :  { %v409_v0 = vadd.f32 %v2047_v42, %v408_v63  ;;  %v648_v3 = vmax.f32 %v406_v60, 0.0 }
  0xe6   :  { %v651_v2 = vmax.f32 %v417_v62, 0.0 }
  0xe7   :  { %v649_v4 = vmax.f32 %v409_v0, 0.0 }
  0xe8   :  { %v711_v5 = vpack.c.bf16 %v651_v2, %v650_v1 }
  0xe9   :  { %v1638_v6 = vpop.f32.mrb[8].mxu0  ;;  %v710_v7 = vpack.c.bf16 %v649_v4, %v648_v3 }
  0xea   :  { %v430_v8 = vadd.f32 %v1638_v6, %v2047_v42  ;;  %v421_v9 = vpop.f32.mrb[9].mxu0 }
  0xeb   :  { %v422_v10 = vadd.f32 %v2047_v42, %v421_v9  ;;  %v1639_v11 = vpop.f32.mrb[10].mxu0  ;;  %1712 = vmatprep.mubr.bf16.mxu1 %v710_v7 }
  0xec   :  { %v433_v12 = vadd.f32 %v1639_v11, %v2047_v42  ;;  %v424_v13 = vpop.f32.mrb[11].mxu0  ;;  %1713 = vmatmul.mubr.bf16.vlgmr.msra.gmra.mrb[0].mxu1 %v711_v5  ;;  %v654_v15 = vmax.f32 %v430_v8, 0.0 }
  0xed   :  { %v425_v14 = vadd.f32 %v2047_v42, %v424_v13  ;;  %v652_v17 = vmax.f32 %v422_v10, 0.0 }
  0xee   :  { %v655_v16 = vmax.f32 %v433_v12, 0.0 }
  0xef   :  { %v653_v18 = vmax.f32 %v425_v14, 0.0 }
  0xf0   :  { %v713_v19 = vpack.c.bf16 %v655_v16, %v654_v15 }
  0xf1   :  { %v712_v20 = vpack.c.bf16 %v653_v18, %v652_v17  ;;  %v1642_v21 = vpop.f32.mrb[12].mxu0 }
  0xf2   :  { %v446_v22 = vadd.f32 %v1642_v21, %v2047_v42  ;;  %v437_v23 = vpop.f32.mrb[13].mxu0 }
  0xf3   :  { %v438_v24 = vadd.f32 %v2047_v42, %v437_v23  ;;  %v1643_v25 = vpop.f32.mrb[14].mxu0  ;;  %1716 = vmatprep.mubr.bf16.mxu1 %v712_v20 }
  0xf4   :  { %v449_v26 = vadd.f32 %v1643_v25, %v2047_v42  ;;  %v440_v27 = vpop.f32.mrb[15].mxu0  ;;  %1717 = vmatmul.mubr.bf16.gmra.mrb[4].mxu1 %v713_v19  ;;  %v658_v29 = vmax.f32 %v446_v22, 0.0 }
  0xf5   :  { %v441_v28 = vadd.f32 %v2047_v42, %v440_v27  ;;  %v656_v31 = vmax.f32 %v438_v24, 0.0 }
  0xf6   :  { %v659_v30 = vmax.f32 %v449_v26, 0.0 }
  0xf7   :  { %v657_v32 = vmax.f32 %v441_v28, 0.0 }
  0xf8   :  { %v715_v33 = vpack.c.bf16 %v659_v30, %v658_v29 }
  0xf9   :  { %v714_v34 = vpack.c.bf16 %v657_v32, %v656_v31  ;;  %v1646_v35 = vpop.f32.mrb[16].mxu0 }
  0xfa   :  { %v462_v36 = vadd.f32 %v1646_v35, %v2047_v42  ;;  %v453_v37 = vpop.f32.mrb[17].mxu0 }
  0xfb   :  { %v454_v38 = vadd.f32 %v2047_v42, %v453_v37  ;;  %v1647_v39 = vpop.f32.mrb[18].mxu0  ;;  %1720 = vmatprep.mubr.bf16.mxu1 %v714_v34 }
  0xfc   :  { %v465_v40 = vadd.f32 %v1647_v39, %v2047_v42  ;;  %v456_v41 = vpop.f32.mrb[19].mxu0  ;;  %1721 = vmatmul.mubr.bf16.gmra.mrb[8].mxu1 %v715_v33  ;;  %v662_v44 = vmax.f32 %v462_v36, 0.0 }
  0xfd   :  { %v457_v43 = vadd.f32 %v2047_v42, %v456_v41  ;;  %v660_v46 = vmax.f32 %v454_v38, 0.0 }
  0xfe   :  { %v663_v45 = vmax.f32 %v465_v40, 0.0 }
  0xff   :  { %v661_v47 = vmax.f32 %v457_v43, 0.0 }
 0x100   :  { %v717_v48 = vpack.c.bf16 %v663_v45, %v662_v44 }
 0x101   :  { %v716_v49 = vpack.c.bf16 %v661_v47, %v660_v46  ;;  %v1650_v50 = vpop.f32.mrb[20].mxu0 }
 0x102   :  { %v478_v51 = vadd.f32 %v1650_v50, %v2047_v42  ;;  %v469_v52 = vpop.f32.mrb[21].mxu0 }
 0x103   :  { %v470_v53 = vadd.f32 %v2047_v42, %v469_v52  ;;  %v1651_v54 = vpop.f32.mrb[22].mxu0  ;;  %1724 = vmatprep.mubr.bf16.mxu1 %v716_v49 }
 0x104   :  { %v481_v55 = vadd.f32 %v1651_v54, %v2047_v42  ;;  %v472_v56 = vpop.f32.mrb[23].mxu0  ;;  %1725 = vmatmul.mubr.bf16.gmra.mrb[12].mxu1 %v717_v48  ;;  %v666_v58 = vmax.f32 %v478_v51, 0.0 }
 0x105   :  { %v473_v57 = vadd.f32 %v2047_v42, %v472_v56  ;;  %v664_v60 = vmax.f32 %v470_v53, 0.0 }
 0x106   :  { %v667_v59 = vmax.f32 %v481_v55, 0.0 }
 0x107   :  { %v665_v61 = vmax.f32 %v473_v57, 0.0 }
 0x108   :  { %v719_v62 = vpack.c.bf16 %v667_v59, %v666_v58 }
 0x109   :  { %v718_v63 = vpack.c.bf16 %v665_v61, %v664_v60  ;;  %v1654_v0 = vpop.f32.mrb[24].mxu0 }
 0x10a   :  { %v494_v1 = vadd.f32 %v1654_v0, %v2047_v42  ;;  %v485_v2 = vpop.f32.mrb[25].mxu0 }
 0x10b   :  { %v486_v3 = vadd.f32 %v2047_v42, %v485_v2  ;;  %v1655_v4 = vpop.f32.mrb[26].mxu0  ;;  %1728 = vmatprep.mubr.bf16.mxu1 %v718_v63 }
 0x10c   :  { %v497_v5 = vadd.f32 %v1655_v4, %v2047_v42  ;;  %v488_v6 = vpop.f32.mrb[27].mxu0  ;;  %1729 = vmatmul.mubr.bf16.gmra.mrb[16].mxu1 %v719_v62  ;;  %v670_v8 = vmax.f32 %v494_v1, 0.0 }
 0x10d   :  { %v489_v7 = vadd.f32 %v2047_v42, %v488_v6  ;;  %v668_v10 = vmax.f32 %v486_v3, 0.0 }
 0x10e   :  { %v671_v9 = vmax.f32 %v497_v5, 0.0 }
 0x10f   :  { %v669_v11 = vmax.f32 %v489_v7, 0.0 }
 0x110   :  { %v721_v12 = vpack.c.bf16 %v671_v9, %v670_v8 }
 0x111   :  { %v720_v13 = vpack.c.bf16 %v669_v11, %v668_v10  ;;  %v1658_v14 = vpop.f32.mrb[28].mxu0 }
 0x112   :  { %v510_v15 = vadd.f32 %v1658_v14, %v2047_v42  ;;  %v501_v16 = vpop.f32.mrb[29].mxu0 }
 0x113   :  { %v502_v17 = vadd.f32 %v2047_v42, %v501_v16  ;;  %v1659_v18 = vpop.f32.mrb[30].mxu0  ;;  %1732 = vmatprep.mubr.bf16.mxu1 %v720_v13 }
 0x114   :  { %v513_v19 = vadd.f32 %v1659_v18, %v2047_v42  ;;  %v504_v20 = vpop.f32.mrb[31].mxu0  ;;  %1733 = vmatmul.mubr.bf16.gmra.mrb[20].mxu1 %v721_v12  ;;  %v674_v22 = vmax.f32 %v510_v15, 0.0 }
 0x115   :  { %v505_v21 = vadd.f32 %v2047_v42, %v504_v20  ;;  %v672_v24 = vmax.f32 %v502_v17, 0.0 }
 0x116   :  { %v675_v23 = vmax.f32 %v513_v19, 0.0 }
 0x117   :  { %v673_v25 = vmax.f32 %v505_v21, 0.0 }
 0x118   :  { %v723_v26 = vpack.c.bf16 %v675_v23, %v674_v22 }
 0x119   :  { %v722_v27 = vpack.c.bf16 %v673_v25, %v672_v24  ;;  %v1662_v28 = vpop.f32.mrb[32].mxu0 }
 0x11a   :  { %v526_v29 = vadd.f32 %v1662_v28, %v2047_v42  ;;  %v517_v30 = vpop.f32.mrb[33].mxu0 }
 0x11b   :  { %v518_v31 = vadd.f32 %v2047_v42, %v517_v30  ;;  %v1663_v32 = vpop.f32.mrb[34].mxu0  ;;  %1736 = vmatprep.mubr.bf16.mxu1 %v722_v27 }
 0x11c   :  { %v529_v33 = vadd.f32 %v1663_v32, %v2047_v42  ;;  %v520_v34 = vpop.f32.mrb[35].mxu0  ;;  %1737 = vmatmul.mubr.bf16.gmra.mrb[24].mxu1 %v723_v26  ;;  %v678_v36 = vmax.f32 %v526_v29, 0.0 }
 0x11d   :  { %v521_v35 = vadd.f32 %v2047_v42, %v520_v34  ;;  %v676_v38 = vmax.f32 %v518_v31, 0.0 }
 0x11e   :  { %v679_v37 = vmax.f32 %v529_v33, 0.0 }
 0x11f   :  { %v677_v39 = vmax.f32 %v521_v35, 0.0 }
 0x120   :  { %v725_v40 = vpack.c.bf16 %v679_v37, %v678_v36 }
 0x121   :  { %v724_v41 = vpack.c.bf16 %v677_v39, %v676_v38  ;;  %v1666_v43 = vpop.f32.mrb[36].mxu0 }
 0x122   :  { %v542_v44 = vadd.f32 %v1666_v43, %v2047_v42  ;;  %v533_v45 = vpop.f32.mrb[37].mxu0 }
 0x123   :  { %v534_v46 = vadd.f32 %v2047_v42, %v533_v45  ;;  %v1667_v47 = vpop.f32.mrb[38].mxu0  ;;  %1740 = vmatprep.mubr.bf16.mxu1 %v724_v41 }
 0x124   :  { %v545_v48 = vadd.f32 %v1667_v47, %v2047_v42  ;;  %v536_v49 = vpop.f32.mrb[39].mxu0  ;;  %1741 = vmatmul.mubr.bf16.gmra.mrb[28].mxu1 %v725_v40  ;;  %v682_v51 = vmax.f32 %v542_v44, 0.0 }
 0x125   :  { %v537_v50 = vadd.f32 %v2047_v42, %v536_v49  ;;  %v680_v53 = vmax.f32 %v534_v46, 0.0 }
 0x126   :  { %v683_v52 = vmax.f32 %v545_v48, 0.0 }
 0x127   :  { %v681_v54 = vmax.f32 %v537_v50, 0.0 }
 0x128   :  { %v727_v55 = vpack.c.bf16 %v683_v52, %v682_v51 }
 0x129   :  { %v726_v56 = vpack.c.bf16 %v681_v54, %v680_v53  ;;  %v1670_v57 = vpop.f32.mrb[40].mxu0 }
 0x12a   :  { %v558_v58 = vadd.f32 %v1670_v57, %v2047_v42  ;;  %v549_v59 = vpop.f32.mrb[41].mxu0 }
 0x12b   :  { %v550_v60 = vadd.f32 %v2047_v42, %v549_v59  ;;  %v1671_v61 = vpop.f32.mrb[42].mxu0  ;;  %1744 = vmatprep.mubr.bf16.mxu1 %v726_v56 }
 0x12c   :  { %v561_v62 = vadd.f32 %v1671_v61, %v2047_v42  ;;  %v552_v63 = vpop.f32.mrb[43].mxu0  ;;  %1745 = vmatmul.mubr.bf16.gmra.mrb[32].mxu1 %v727_v55  ;;  %v686_v1 = vmax.f32 %v558_v58, 0.0 }
 0x12d   :  { %v553_v0 = vadd.f32 %v2047_v42, %v552_v63  ;;  %v684_v3 = vmax.f32 %v550_v60, 0.0 }
 0x12e   :  { %v687_v2 = vmax.f32 %v561_v62, 0.0 }
 0x12f   :  { %v685_v4 = vmax.f32 %v553_v0, 0.0 }
 0x130   :  { %v729_v5 = vpack.c.bf16 %v687_v2, %v686_v1 }
 0x131   :  { %v728_v6 = vpack.c.bf16 %v685_v4, %v684_v3  ;;  %v1674_v7 = vpop.f32.mrb[44].mxu0 }
 0x132   :  { %v574_v8 = vadd.f32 %v1674_v7, %v2047_v42  ;;  %v565_v9 = vpop.f32.mrb[45].mxu0 }
 0x133   :  { %v566_v10 = vadd.f32 %v2047_v42, %v565_v9  ;;  %v1675_v11 = vpop.f32.mrb[46].mxu0  ;;  %1748 = vmatprep.mubr.bf16.mxu1 %v728_v6 }
 0x134   :  { %v577_v12 = vadd.f32 %v1675_v11, %v2047_v42  ;;  %v568_v13 = vpop.f32.mrb[47].mxu0  ;;  %1749 = vmatmul.mubr.bf16.gmra.mrb[36].mxu1 %v729_v5  ;;  %v690_v15 = vmax.f32 %v574_v8, 0.0 }
 0x135   :  { %v569_v14 = vadd.f32 %v2047_v42, %v568_v13  ;;  %v688_v17 = vmax.f32 %v566_v10, 0.0 }
 0x136   :  { %v691_v16 = vmax.f32 %v577_v12, 0.0 }
 0x137   :  { %v689_v18 = vmax.f32 %v569_v14, 0.0  ;;  %v2116_v14 = vld [vmem:[%s2226_s4] ss:$0 sm:$0xff]  ;;  %s1856_s4 = smov [#allocation2]  }
 0x138   :  { %v731_v19 = vpack.c.bf16 %v691_v16, %v690_v15  ;;  %s1468_s23 = sshll.u32 %s1856_s4, 4  ;;  %s1469_s23 = int_to_ptr.vmem [resolvable:$true] %s1468_s23 }
 0x139   :  { %v730_v20 = vpack.c.bf16 %v689_v18, %v688_v17  ;;  %v1678_v21 = vpop.f32.mrb[48].mxu0  ;;  %s1832_s24 = scalar_lea.vmem %s1469_s23, 512  ;;  %p1837_p1 = scmp.lt.s32.totalorder %s1469_s23, %s1469_s23 }
 0x13a   :  { %v590_v22 = vadd.f32 %v1678_v21, %v2047_v42  ;;  %v581_v23 = vpop.f32.mrb[49].mxu0  ;;  %p1833_p0 = scmp.ne.s32.totalorder %s1469_s23, %s1832_s24  ;;  %p1838_p2 = scmp.lt.s32.totalorder %s1832_s24, %s1832_s24 }
 0x13b   :  { %v582_v24 = vadd.f32 %v2047_v42, %v581_v23  ;;  %v1679_v25 = vpop.f32.mrb[50].mxu0  ;;  %1752 = vmatprep.mubr.bf16.mxu1 %v730_v20 }
 0x13c   :  { %v593_v26 = vadd.f32 %v1679_v25, %v2047_v42  ;;  %v584_v27 = vpop.f32.mrb[51].mxu0  ;;  %1753 = vmatmul.mubr.bf16.gmra.mrb[40].mxu1 %v731_v19  ;;  %v694_v29 = vmax.f32 %v590_v22, 0.0  ;;  %p1839_p3 = por %p1838_p2, %p1837_p1 }
 0x13d   :  { %v585_v28 = vadd.f32 %v2047_v42, %v584_v27  ;;  %v692_v31 = vmax.f32 %v582_v24, 0.0 }
 0x13e   :  { %v695_v30 = vmax.f32 %v593_v26, 0.0  ;;  %p1840_p4 = pnand %p1839_p3, %p1833_p0 }
 0x13f   :  { %v693_v32 = vmax.f32 %v585_v28, 0.0 }
 0x140   :  { %v733_v33 = vpack.c.bf16 %v695_v30, %v694_v29 }
 0x141   :  { %v732_v34 = vpack.c.bf16 %v693_v32, %v692_v31  ;;  %v1682_v35 = vpop.f32.mrb[52].mxu0 }
 0x142   :  { %v606_v36 = vadd.f32 %v1682_v35, %v2047_v42  ;;  %v597_v37 = vpop.f32.mrb[53].mxu0 }
 0x143   :  { %v598_v38 = vadd.f32 %v2047_v42, %v597_v37  ;;  %v1683_v39 = vpop.f32.mrb[54].mxu0  ;;  %1756 = vmatprep.mubr.bf16.mxu1 %v732_v34 }
 0x144   :  { %v609_v40 = vadd.f32 %v1683_v39, %v2047_v42  ;;  %v600_v41 = vpop.f32.mrb[55].mxu0  ;;  %1757 = vmatmul.mubr.bf16.gmra.mrb[44].mxu1 %v733_v33  ;;  %v698_v44 = vmax.f32 %v606_v36, 0.0 }
 0x145   :  { %v601_v43 = vadd.f32 %v2047_v42, %v600_v41  ;;  %v696_v46 = vmax.f32 %v598_v38, 0.0 }
 0x146   :  { %v699_v45 = vmax.f32 %v609_v40, 0.0 }
 0x147   :  { %v697_v47 = vmax.f32 %v601_v43, 0.0 }
 0x148   :  { %v735_v48 = vpack.c.bf16 %v699_v45, %v698_v44 }
 0x149   :  { %v734_v49 = vpack.c.bf16 %v697_v47, %v696_v46  ;;  %v1686_v50 = vpop.f32.mrb[56].mxu0 }
 0x14a   :  { %v622_v51 = vadd.f32 %v1686_v50, %v2047_v42  ;;  %v613_v52 = vpop.f32.mrb[57].mxu0 }
 0x14b   :  { %v614_v53 = vadd.f32 %v2047_v42, %v613_v52  ;;  %v1687_v54 = vpop.f32.mrb[58].mxu0  ;;  %1760 = vmatprep.mubr.bf16.mxu1 %v734_v49 }
 0x14c   :  { %v625_v55 = vadd.f32 %v1687_v54, %v2047_v42  ;;  %v616_v56 = vpop.f32.mrb[59].mxu0  ;;  %1761 = vmatmul.mubr.bf16.gmra.mrb[48].mxu1 %v735_v48  ;;  %v702_v58 = vmax.f32 %v622_v51, 0.0 }
 0x14d   :  { %v617_v57 = vadd.f32 %v2047_v42, %v616_v56  ;;  %v700_v60 = vmax.f32 %v614_v53, 0.0 }
 0x14e   :  { %v703_v59 = vmax.f32 %v625_v55, 0.0 }
 0x14f   :  { %v701_v61 = vmax.f32 %v617_v57, 0.0 }
 0x150   :  { %v737_v62 = vpack.c.bf16 %v703_v59, %v702_v58 }
 0x151   :  { %v736_v63 = vpack.c.bf16 %v701_v61, %v700_v60  ;;  %v1690_v0 = vpop.f32.mrb[60].mxu0 }
 0x152   :  { %v638_v1 = vadd.f32 %v1690_v0, %v2047_v42  ;;  %v629_v2 = vpop.f32.mrb[61].mxu0 }
 0x153   :  { %v630_v3 = vadd.f32 %v2047_v42, %v629_v2  ;;  %v1691_v4 = vpop.f32.mrb[62].mxu0  ;;  %1764 = vmatprep.mubr.bf16.mxu1 %v736_v63 }
 0x154   :  { %v641_v5 = vadd.f32 %v1691_v4, %v2047_v42  ;;  %v632_v6 = vpop.f32.mrb[63].mxu0  ;;  %1765 = vmatmul.mubr.bf16.gmra.mrb[52].mxu1 %v737_v62  ;;  %v706_v8 = vmax.f32 %v638_v1, 0.0 }
 0x155   :  { %v633_v7 = vadd.f32 %v2047_v42, %v632_v6  ;;  %v704_v10 = vmax.f32 %v630_v3, 0.0 }
 0x156   :  { %v707_v9 = vmax.f32 %v641_v5, 0.0 }
 0x157   :  { %v705_v11 = vmax.f32 %v633_v7, 0.0 }
 0x158   :  { %v739_v12 = vpack.c.bf16 %v707_v9, %v706_v8 }
 0x159   :  { %v738_v13 = vpack.c.bf16 %v705_v11, %v704_v10 }
 0x15b   :  { %1768 = vmatprep.mubr.bf16.mxu1 %v738_v13 }
 0x15c   :  { %1769 = vmatmul.mubr.bf16.gmra.mrb[56].mxu1 %v739_v12 }
 0x1b7   :  { %v1710_v15 = vpop.f32.mrb[64].mxu0 }
 0x1b8   :  { %v854_v16 = vadd.f32 %v1710_v15, %v2116_v14  ;;  %v845_v17 = vpop.f32.mrb[65].mxu0 }
 0x1b9   :  { %v846_v18 = vadd.f32 %v2116_v14, %v845_v17  ;;  %v1711_v42 = vpop.f32.mrb[66].mxu0 }
 0x1ba   :  { %v857_v19 = vadd.f32 %v1711_v42, %v2116_v14  ;;  %v848_v20 = vpop.f32.mrb[67].mxu0  ;;  %v1102_v22 = vmax.f32 %v854_v16, 0.0 }
 0x1bb   :  { %v849_v21 = vadd.f32 %v2116_v14, %v848_v20  ;;  %v1100_v24 = vmax.f32 %v846_v18, 0.0 }
 0x1bc   :  { %v1103_v23 = vmax.f32 %v857_v19, 0.0 }
 0x1bd   :  { %v1101_v25 = vmax.f32 %v849_v21, 0.0 }
 0x1be   :  { %v1171_v26 = vmax.f32 %v1102_v22, %v1103_v23 }
 0x1bf   :  { %v1164_v27 = vmax.f32 %v1100_v24, %v1101_v25  ;;  %v1714_v28 = vpop.f32.mrb[0].mxu1 }
 0x1c0   :  { %v1172_v29 = vrot.slane %v1171_v26, 4  ;;  %v870_v30 = vadd.f32 %v1714_v28, %v2116_v14  ;;  %v861_v31 = vpop.f32.mrb[1].mxu1 }
 0x1c1   :  { %v1165_v32 = vrot.slane %v1164_v27, 4  ;;  %v862_v33 = vadd.f32 %v2116_v14, %v861_v31  ;;  %v1715_v34 = vpop.f32.mrb[2].mxu1 }
 0x1c2   :  { %v1173_v35 = vmax.f32 %v1171_v26, %v1172_v29  ;;  %v873_v36 = vadd.f32 %v1715_v34, %v2116_v14  ;;  %v864_v37 = vpop.f32.mrb[3].mxu1  ;;  %v1106_v41 = vmax.f32 %v870_v30, 0.0 }
 0x1c3   :  { %v1166_v38 = vmax.f32 %v1164_v27, %v1165_v32  ;;  %v865_v39 = vadd.f32 %v2116_v14, %v864_v37  ;;  %v1104_v45 = vmax.f32 %v862_v33, 0.0 }
 0x1c4   :  { %v1174_v40 = vrot.slane %v1173_v35, 2  ;;  %v1107_v43 = vmax.f32 %v873_v36, 0.0 }
 0x1c5   :  { %v1167_v44 = vrot.slane %v1166_v38, 2  ;;  %v1105_v46 = vmax.f32 %v865_v39, 0.0 }
 0x1c6   :  { %v1175_v47 = vmax.f32 %v1173_v35, %v1174_v40  ;;  %v1185_v48 = vmax.f32 %v1106_v41, %v1107_v43 }
 0x1c7   :  { %v1168_v49 = vmax.f32 %v1166_v38, %v1167_v44  ;;  %v1178_v50 = vmax.f32 %v1104_v45, %v1105_v46  ;;  %v1718_v51 = vpop.f32.mrb[4].mxu1 }
 0x1c8   :  { %v1176_v52 = vrot.slane %v1175_v47, 1  ;;  %v1186_v53 = vrot.slane %v1185_v48, 4  ;;  %v886_v54 = vadd.f32 %v1718_v51, %v2116_v14  ;;  %v877_v55 = vpop.f32.mrb[5].mxu1 }
 0x1c9   :  { %v1169_v56 = vrot.slane %v1168_v49, 1  ;;  %v1179_v57 = vrot.slane %v1178_v50, 4  ;;  %v878_v58 = vadd.f32 %v2116_v14, %v877_v55  ;;  %v1719_v59 = vpop.f32.mrb[6].mxu1 }
 0x1ca   :  { %v1177_v60 = vmax.f32 %v1175_v47, %v1176_v52  ;;  %v1187_v61 = vmax.f32 %v1185_v48, %v1186_v53  ;;  %v889_v62 = vadd.f32 %v1719_v59, %v2116_v14  ;;  %v880_v63 = vpop.f32.mrb[7].mxu1  ;;  %v1110_v4 = vmax.f32 %v886_v54, 0.0 }
 0x1cb   :  { %v1170_v0 = vmax.f32 %v1168_v49, %v1169_v56  ;;  %v1180_v1 = vmax.f32 %v1178_v50, %v1179_v57  ;;  %v881_v2 = vadd.f32 %v2116_v14, %v880_v63  ;;  %v1108_v8 = vmax.f32 %v878_v58, 0.0 }
 0x1cc   :  { %v1188_v3 = vrot.slane %v1187_v61, 2  ;;  %v1111_v5 = vmax.f32 %v889_v62, 0.0 }
 0x1cd   :  { %v1421_v6 = vsel %vm1420_vm2, %v1177_v60, %v1170_v0  ;;  %v1181_v7 = vrot.slane %v1180_v1, 2  ;;  %v1109_v9 = vmax.f32 %v881_v2, 0.0 }
 0x1ce   :  { %v1189_v10 = vmax.f32 %v1187_v61, %v1188_v3  ;;  %v1199_v11 = vmax.f32 %v1110_v4, %v1111_v5 }
 0x1cf   :  { %v1182_v12 = vmax.f32 %v1180_v1, %v1181_v7  ;;  %v1192_v13 = vmax.f32 %v1108_v8, %v1109_v9  ;;  %v1722_v15 = vpop.f32.mrb[8].mxu1 }
 0x1d0   :  { %v1190_v16 = vrot.slane %v1189_v10, 1  ;;  %v1200_v17 = vrot.slane %v1199_v11, 4  ;;  %v902_v18 = vadd.f32 %v1722_v15, %v2116_v14  ;;  %v893_v42 = vpop.f32.mrb[9].mxu1 }
 0x1d1   :  { %v1183_v19 = vrot.slane %v1182_v12, 1  ;;  %v1193_v20 = vrot.slane %v1192_v13, 4  ;;  %v894_v21 = vadd.f32 %v2116_v14, %v893_v42  ;;  %v1723_v22 = vpop.f32.mrb[10].mxu1 }
 0x1d2   :  { %v1201_v23 = vmax.f32 %v1199_v11, %v1200_v17  ;;  %v905_v24 = vadd.f32 %v1723_v22, %v2116_v14  ;;  %v896_v25 = vpop.f32.mrb[11].mxu1  ;;  %v1191_v29 = vmax.f32 %v1189_v10, %v1190_v16  ;;  %v1114_v31 = vmax.f32 %v902_v18, 0.0 }
 0x1d3   :  { %v1184_v26 = vmax.f32 %v1182_v12, %v1183_v19  ;;  %v1194_v27 = vmax.f32 %v1192_v13, %v1193_v20  ;;  %v897_v28 = vadd.f32 %v2116_v14, %v896_v25  ;;  %v1112_v35 = vmax.f32 %v894_v21, 0.0 }
 0x1d4   :  { %v1202_v30 = vrot.slane %v1201_v23, 2  ;;  %v1115_v32 = vmax.f32 %v905_v24, 0.0 }
 0x1d5   :  { %v1423_v33 = vsel %vm1422_vm3, %v1184_v26, %v1421_v6  ;;  %v1195_v34 = vrot.slane %v1194_v27, 2  ;;  %v1113_v36 = vmax.f32 %v897_v28, 0.0 }
 0x1d6   :  { %v1203_v37 = vmax.f32 %v1201_v23, %v1202_v30  ;;  %v1425_v38 = vsel %vm1424_vm4, %v1191_v29, %v1423_v33  ;;  %v1213_v39 = vmax.f32 %v1114_v31, %v1115_v32 }
 0x1d7   :  { %v1196_v40 = vmax.f32 %v1194_v27, %v1195_v34  ;;  %v1206_v41 = vmax.f32 %v1112_v35, %v1113_v36  ;;  %v1726_v43 = vpop.f32.mrb[12].mxu1 }
 0x1d8   :  { %v1204_v44 = vrot.slane %v1203_v37, 1  ;;  %v1214_v45 = vrot.slane %v1213_v39, 4  ;;  %v918_v46 = vadd.f32 %v1726_v43, %v2116_v14  ;;  %v909_v47 = vpop.f32.mrb[13].mxu1 }
 0x1d9   :  { %v1197_v48 = vrot.slane %v1196_v40, 1  ;;  %v1207_v49 = vrot.slane %v1206_v41, 4  ;;  %v910_v50 = vadd.f32 %v2116_v14, %v909_v47  ;;  %v1727_v51 = vpop.f32.mrb[14].mxu1 }
 0x1da   :  { %v1215_v52 = vmax.f32 %v1213_v39, %v1214_v45  ;;  %v921_v53 = vadd.f32 %v1727_v51, %v2116_v14  ;;  %v912_v54 = vpop.f32.mrb[15].mxu1  ;;  %v1205_v58 = vmax.f32 %v1203_v37, %v1204_v44  ;;  %v1118_v60 = vmax.f32 %v918_v46, 0.0 }
 0x1db   :  { %v1198_v55 = vmax.f32 %v1196_v40, %v1197_v48  ;;  %v1208_v56 = vmax.f32 %v1206_v41, %v1207_v49  ;;  %v913_v57 = vadd.f32 %v2116_v14, %v912_v54  ;;  %v1116_v0 = vmax.f32 %v910_v50, 0.0 }
 0x1dc   :  { %v1216_v59 = vrot.slane %v1215_v52, 2  ;;  %v1119_v61 = vmax.f32 %v921_v53, 0.0 }
 0x1dd   :  { %v1427_v62 = vsel %vm1426_vm5, %v1198_v55, %v1425_v38  ;;  %v1209_v63 = vrot.slane %v1208_v56, 2  ;;  %v1117_v1 = vmax.f32 %v913_v57, 0.0 }
 0x1de   :  { %v1217_v2 = vmax.f32 %v1215_v52, %v1216_v59  ;;  %v1429_v3 = vsel %vm1428_vm6, %v1205_v58, %v1427_v62  ;;  %v1227_v4 = vmax.f32 %v1118_v60, %v1119_v61 }
 0x1df   :  { %v1210_v5 = vmax.f32 %v1208_v56, %v1209_v63  ;;  %v1220_v6 = vmax.f32 %v1116_v0, %v1117_v1  ;;  %v1730_v7 = vpop.f32.mrb[16].mxu1 }
 0x1e0   :  { %v1218_v8 = vrot.slane %v1217_v2, 1  ;;  %v1228_v9 = vrot.slane %v1227_v4, 4  ;;  %v934_v10 = vadd.f32 %v1730_v7, %v2116_v14  ;;  %v925_v11 = vpop.f32.mrb[17].mxu1 }
 0x1e1   :  { %v1211_v12 = vrot.slane %v1210_v5, 1  ;;  %v1221_v13 = vrot.slane %v1220_v6, 4  ;;  %v926_v15 = vadd.f32 %v2116_v14, %v925_v11  ;;  %v1731_v16 = vpop.f32.mrb[18].mxu1 }
 0x1e2   :  { %v1229_v17 = vmax.f32 %v1227_v4, %v1228_v9  ;;  %v937_v18 = vadd.f32 %v1731_v16, %v2116_v14  ;;  %v928_v42 = vpop.f32.mrb[19].mxu1  ;;  %v1219_v22 = vmax.f32 %v1217_v2, %v1218_v8  ;;  %v1122_v24 = vmax.f32 %v934_v10, 0.0 }
 0x1e3   :  { %v1212_v19 = vmax.f32 %v1210_v5, %v1211_v12  ;;  %v1222_v20 = vmax.f32 %v1220_v6, %v1221_v13  ;;  %v929_v21 = vadd.f32 %v2116_v14, %v928_v42  ;;  %v1120_v28 = vmax.f32 %v926_v15, 0.0 }
 0x1e4   :  { %v1230_v23 = vrot.slane %v1229_v17, 2  ;;  %v1123_v25 = vmax.f32 %v937_v18, 0.0 }
 0x1e5   :  { %v1431_v26 = vsel %vm1430_vm7, %v1212_v19, %v1429_v3  ;;  %v1223_v27 = vrot.slane %v1222_v20, 2  ;;  %v1121_v29 = vmax.f32 %v929_v21, 0.0 }
 0x1e6   :  { %v1231_v30 = vmax.f32 %v1229_v17, %v1230_v23  ;;  %v1241_v31 = vmax.f32 %v1122_v24, %v1123_v25  ;;  %v1433_v32 = vsel %vm1432_vm8, %v1219_v22, %v1431_v26 }
 0x1e7   :  { %v1224_v33 = vmax.f32 %v1222_v20, %v1223_v27  ;;  %v1234_v34 = vmax.f32 %v1120_v28, %v1121_v29  ;;  %v1734_v35 = vpop.f32.mrb[20].mxu1  ;;  %1459 = vst [vmem:[#allocation2] sm:$0xff] %v1433_v32 }
 0x1e8   :  { %v1232_v36 = vrot.slane %v1231_v30, 1  ;;  %v1242_v37 = vrot.slane %v1241_v31, 4  ;;  %v950_v38 = vadd.f32 %v1734_v35, %v2116_v14  ;;  %v941_v39 = vpop.f32.mrb[21].mxu1 }
 0x1e9   :  { %v1225_v40 = vrot.slane %v1224_v33, 1  ;;  %v1235_v41 = vrot.slane %v1234_v34, 4  ;;  %v942_v43 = vadd.f32 %v2116_v14, %v941_v39  ;;  %v1735_v44 = vpop.f32.mrb[22].mxu1 }
 0x1ea   :  { %v1233_v45 = vmax.f32 %v1231_v30, %v1232_v36  ;;  %v1243_v46 = vmax.f32 %v1241_v31, %v1242_v37  ;;  %v953_v47 = vadd.f32 %v1735_v44, %v2116_v14  ;;  %v944_v48 = vpop.f32.mrb[23].mxu1  ;;  %v1126_v53 = vmax.f32 %v950_v38, 0.0 }
 0x1eb   :  { %v1226_v49 = vmax.f32 %v1224_v33, %v1225_v40  ;;  %v1236_v50 = vmax.f32 %v1234_v34, %v1235_v41  ;;  %v945_v51 = vadd.f32 %v2116_v14, %v944_v48  ;;  %v1124_v57 = vmax.f32 %v942_v43, 0.0 }
 0x1ec   :  { %v1244_v52 = vrot.slane %v1243_v46, 2  ;;  %v1127_v54 = vmax.f32 %v953_v47, 0.0 }
 0x1ed   :  { %v1434_v55 = vsel %vm1420_vm2, %v1233_v45, %v1226_v49  ;;  %v1237_v56 = vrot.slane %v1236_v50, 2  ;;  %v1125_v58 = vmax.f32 %v945_v51, 0.0 }
 0x1ee   :  { %v1245_v59 = vmax.f32 %v1243_v46, %v1244_v52  ;;  %v1255_v60 = vmax.f32 %v1126_v53, %v1127_v54 }
 0x1ef   :  { %v1238_v61 = vmax.f32 %v1236_v50, %v1237_v56  ;;  %v1248_v62 = vmax.f32 %v1124_v57, %v1125_v58  ;;  %v1738_v63 = vpop.f32.mrb[24].mxu1 }
 0x1f0   :  { %v1246_v0 = vrot.slane %v1245_v59, 1  ;;  %v1256_v1 = vrot.slane %v1255_v60, 4  ;;  %v966_v2 = vadd.f32 %v1738_v63, %v2116_v14  ;;  %v957_v3 = vpop.f32.mrb[25].mxu1 }
 0x1f1   :  { %v1239_v4 = vrot.slane %v1238_v61, 1  ;;  %v1249_v5 = vrot.slane %v1248_v62, 4  ;;  %v958_v6 = vadd.f32 %v2116_v14, %v957_v3  ;;  %v1739_v7 = vpop.f32.mrb[26].mxu1 }
 0x1f2   :  { %v1257_v8 = vmax.f32 %v1255_v60, %v1256_v1  ;;  %v969_v9 = vadd.f32 %v1739_v7, %v2116_v14  ;;  %v960_v10 = vpop.f32.mrb[27].mxu1  ;;  %v1247_v15 = vmax.f32 %v1245_v59, %v1246_v0  ;;  %v1130_v17 = vmax.f32 %v966_v2, 0.0 }
 0x1f3   :  { %v1240_v11 = vmax.f32 %v1238_v61, %v1239_v4  ;;  %v1250_v12 = vmax.f32 %v1248_v62, %v1249_v5  ;;  %v961_v13 = vadd.f32 %v2116_v14, %v960_v10  ;;  %v1128_v20 = vmax.f32 %v958_v6, 0.0 }
 0x1f4   :  { %v1258_v16 = vrot.slane %v1257_v8, 2  ;;  %v1131_v18 = vmax.f32 %v969_v9, 0.0 }
 0x1f5   :  { %v1435_v42 = vsel %vm1422_vm3, %v1240_v11, %v1434_v55  ;;  %v1251_v19 = vrot.slane %v1250_v12, 2  ;;  %v1129_v21 = vmax.f32 %v961_v13, 0.0 }
 0x1f6   :  { %v1259_v22 = vmax.f32 %v1257_v8, %v1258_v16  ;;  %v1436_v23 = vsel %vm1424_vm4, %v1247_v15, %v1435_v42  ;;  %v1269_v24 = vmax.f32 %v1130_v17, %v1131_v18 }
 0x1f7   :  { %v1252_v25 = vmax.f32 %v1250_v12, %v1251_v19  ;;  %v1262_v26 = vmax.f32 %v1128_v20, %v1129_v21  ;;  %v1742_v27 = vpop.f32.mrb[28].mxu1 }
 0x1f8   :  { %v1260_v28 = vrot.slane %v1259_v22, 1  ;;  %v1270_v29 = vrot.slane %v1269_v24, 4  ;;  %v982_v30 = vadd.f32 %v1742_v27, %v2116_v14  ;;  %v973_v31 = vpop.f32.mrb[29].mxu1 }
 0x1f9   :  { %v1253_v32 = vrot.slane %v1252_v25, 1  ;;  %v1263_v33 = vrot.slane %v1262_v26, 4  ;;  %v974_v34 = vadd.f32 %v2116_v14, %v973_v31  ;;  %v1743_v35 = vpop.f32.mrb[30].mxu1 }
 0x1fa   :  { %v1271_v36 = vmax.f32 %v1269_v24, %v1270_v29  ;;  %v985_v37 = vadd.f32 %v1743_v35, %v2116_v14  ;;  %v976_v38 = vpop.f32.mrb[31].mxu1  ;;  %v1261_v43 = vmax.f32 %v1259_v22, %v1260_v28  ;;  %v1134_v45 = vmax.f32 %v982_v30, 0.0 }
 0x1fb   :  { %v1254_v39 = vmax.f32 %v1252_v25, %v1253_v32  ;;  %v1264_v40 = vmax.f32 %v1262_v26, %v1263_v33  ;;  %v977_v41 = vadd.f32 %v2116_v14, %v976_v38  ;;  %v1132_v49 = vmax.f32 %v974_v34, 0.0 }
 0x1fc   :  { %v1272_v44 = vrot.slane %v1271_v36, 2  ;;  %v1135_v46 = vmax.f32 %v985_v37, 0.0 }
 0x1fd   :  { %v1437_v47 = vsel %vm1426_vm5, %v1254_v39, %v1436_v23  ;;  %v1265_v48 = vrot.slane %v1264_v40, 2  ;;  %v1133_v50 = vmax.f32 %v977_v41, 0.0 }
 0x1fe   :  { %v1273_v51 = vmax.f32 %v1271_v36, %v1272_v44  ;;  %v1438_v52 = vsel %vm1428_vm6, %v1261_v43, %v1437_v47  ;;  %v1283_v53 = vmax.f32 %v1134_v45, %v1135_v46 }
 0x1ff   :  { %v1266_v54 = vmax.f32 %v1264_v40, %v1265_v48  ;;  %v1276_v55 = vmax.f32 %v1132_v49, %v1133_v50  ;;  %v1746_v56 = vpop.f32.mrb[32].mxu1 }
 0x200   :  { %v1274_v57 = vrot.slane %v1273_v51, 1  ;;  %v1284_v58 = vrot.slane %v1283_v53, 4  ;;  %v998_v59 = vadd.f32 %v1746_v56, %v2116_v14  ;;  %v989_v60 = vpop.f32.mrb[33].mxu1 }
 0x201   :  { %v1267_v61 = vrot.slane %v1266_v54, 1  ;;  %v1277_v62 = vrot.slane %v1276_v55, 4  ;;  %v990_v63 = vadd.f32 %v2116_v14, %v989_v60  ;;  %v1747_v0 = vpop.f32.mrb[34].mxu1 }
 0x202   :  { %v1285_v1 = vmax.f32 %v1283_v53, %v1284_v58  ;;  %v1001_v2 = vadd.f32 %v1747_v0, %v2116_v14  ;;  %v992_v3 = vpop.f32.mrb[35].mxu1  ;;  %v1275_v7 = vmax.f32 %v1273_v51, %v1274_v57  ;;  %v1138_v9 = vmax.f32 %v998_v59, 0.0 }
 0x203   :  { %v1268_v4 = vmax.f32 %v1266_v54, %v1267_v61  ;;  %v1278_v5 = vmax.f32 %v1276_v55, %v1277_v62  ;;  %v993_v6 = vadd.f32 %v2116_v14, %v992_v3  ;;  %v1136_v13 = vmax.f32 %v990_v63, 0.0 }
 0x204   :  { %v1286_v8 = vrot.slane %v1285_v1, 2  ;;  %v1139_v10 = vmax.f32 %v1001_v2, 0.0 }
 0x205   :  { %v1439_v11 = vsel %vm1430_vm7, %v1268_v4, %v1438_v52  ;;  %v1279_v12 = vrot.slane %v1278_v5, 2  ;;  %v1137_v15 = vmax.f32 %v993_v6, 0.0 }
 0x206   :  { %v1287_v16 = vmax.f32 %v1285_v1, %v1286_v8  ;;  %v1297_v17 = vmax.f32 %v1138_v9, %v1139_v10  ;;  %v1440_v18 = vsel %vm1432_vm8, %v1275_v7, %v1439_v11 }
 0x207   :  { %v1280_v42 = vmax.f32 %v1278_v5, %v1279_v12  ;;  %v1290_v19 = vmax.f32 %v1136_v13, %v1137_v15  ;;  %v1750_v20 = vpop.f32.mrb[36].mxu1  ;;  %1460 = vst [vmem:[#allocation2 + $0x8] sm:$0xff] %v1440_v18 }
 0x208   :  { %v1288_v21 = vrot.slane %v1287_v16, 1  ;;  %v1298_v22 = vrot.slane %v1297_v17, 4  ;;  %v1014_v23 = vadd.f32 %v1750_v20, %v2116_v14  ;;  %v1005_v24 = vpop.f32.mrb[37].mxu1 }
 0x209   :  { %v1281_v25 = vrot.slane %v1280_v42, 1  ;;  %v1291_v26 = vrot.slane %v1290_v19, 4  ;;  %v1006_v27 = vadd.f32 %v2116_v14, %v1005_v24  ;;  %v1751_v28 = vpop.f32.mrb[38].mxu1 }
 0x20a   :  { %v1289_v29 = vmax.f32 %v1287_v16, %v1288_v21  ;;  %v1299_v30 = vmax.f32 %v1297_v17, %v1298_v22  ;;  %v1017_v31 = vadd.f32 %v1751_v28, %v2116_v14  ;;  %v1008_v32 = vpop.f32.mrb[39].mxu1  ;;  %v1142_v37 = vmax.f32 %v1014_v23, 0.0 }
 0x20b   :  { %v1282_v33 = vmax.f32 %v1280_v42, %v1281_v25  ;;  %v1292_v34 = vmax.f32 %v1290_v19, %v1291_v26  ;;  %v1009_v35 = vadd.f32 %v2116_v14, %v1008_v32  ;;  %v1140_v41 = vmax.f32 %v1006_v27, 0.0 }
 0x20c   :  { %v1300_v36 = vrot.slane %v1299_v30, 2  ;;  %v1143_v38 = vmax.f32 %v1017_v31, 0.0 }
 0x20d   :  { %v1441_v39 = vsel %vm1420_vm2, %v1289_v29, %v1282_v33  ;;  %v1293_v40 = vrot.slane %v1292_v34, 2  ;;  %v1141_v43 = vmax.f32 %v1009_v35, 0.0 }
 0x20e   :  { %v1301_v44 = vmax.f32 %v1299_v30, %v1300_v36  ;;  %v1311_v45 = vmax.f32 %v1142_v37, %v1143_v38 }
 0x20f   :  { %v1294_v46 = vmax.f32 %v1292_v34, %v1293_v40  ;;  %v1304_v47 = vmax.f32 %v1140_v41, %v1141_v43  ;;  %v1754_v48 = vpop.f32.mrb[40].mxu1 }
 0x210   :  { %v1302_v49 = vrot.slane %v1301_v44, 1  ;;  %v1312_v50 = vrot.slane %v1311_v45, 4  ;;  %v1030_v51 = vadd.f32 %v1754_v48, %v2116_v14  ;;  %v1021_v52 = vpop.f32.mrb[41].mxu1 }
 0x211   :  { %v1295_v53 = vrot.slane %v1294_v46, 1  ;;  %v1305_v54 = vrot.slane %v1304_v47, 4  ;;  %v1022_v55 = vadd.f32 %v2116_v14, %v1021_v52  ;;  %v1755_v56 = vpop.f32.mrb[42].mxu1 }
 0x212   :  { %v1313_v57 = vmax.f32 %v1311_v45, %v1312_v50  ;;  %v1033_v58 = vadd.f32 %v1755_v56, %v2116_v14  ;;  %v1024_v59 = vpop.f32.mrb[43].mxu1  ;;  %v1303_v63 = vmax.f32 %v1301_v44, %v1302_v49  ;;  %v1146_v1 = vmax.f32 %v1030_v51, 0.0 }
 0x213   :  { %v1296_v60 = vmax.f32 %v1294_v46, %v1295_v53  ;;  %v1306_v61 = vmax.f32 %v1304_v47, %v1305_v54  ;;  %v1025_v62 = vadd.f32 %v2116_v14, %v1024_v59  ;;  %v1144_v5 = vmax.f32 %v1022_v55, 0.0 }
 0x214   :  { %v1314_v0 = vrot.slane %v1313_v57, 2  ;;  %v1147_v2 = vmax.f32 %v1033_v58, 0.0 }
 0x215   :  { %v1442_v3 = vsel %vm1422_vm3, %v1296_v60, %v1441_v39  ;;  %v1307_v4 = vrot.slane %v1306_v61, 2  ;;  %v1145_v6 = vmax.f32 %v1025_v62, 0.0 }
 0x216   :  { %v1315_v7 = vmax.f32 %v1313_v57, %v1314_v0  ;;  %v1443_v8 = vsel %vm1424_vm4, %v1303_v63, %v1442_v3  ;;  %v1325_v9 = vmax.f32 %v1146_v1, %v1147_v2 }
 0x217   :  { %v1308_v10 = vmax.f32 %v1306_v61, %v1307_v4  ;;  %v1318_v11 = vmax.f32 %v1144_v5, %v1145_v6  ;;  %v1758_v12 = vpop.f32.mrb[44].mxu1 }
 0x218   :  { %v1316_v13 = vrot.slane %v1315_v7, 1  ;;  %v1326_v15 = vrot.slane %v1325_v9, 4  ;;  %v1046_v16 = vadd.f32 %v1758_v12, %v2116_v14  ;;  %v1037_v17 = vpop.f32.mrb[45].mxu1 }
 0x219   :  { %v1309_v18 = vrot.slane %v1308_v10, 1  ;;  %v1319_v42 = vrot.slane %v1318_v11, 4  ;;  %v1038_v19 = vadd.f32 %v2116_v14, %v1037_v17  ;;  %v1759_v20 = vpop.f32.mrb[46].mxu1 }
 0x21a   :  { %v1327_v21 = vmax.f32 %v1325_v9, %v1326_v15  ;;  %v1049_v22 = vadd.f32 %v1759_v20, %v2116_v14  ;;  %v1040_v23 = vpop.f32.mrb[47].mxu1  ;;  %v1317_v27 = vmax.f32 %v1315_v7, %v1316_v13  ;;  %v1150_v29 = vmax.f32 %v1046_v16, 0.0 }
 0x21b   :  { %v1310_v24 = vmax.f32 %v1308_v10, %v1309_v18  ;;  %v1320_v25 = vmax.f32 %v1318_v11, %v1319_v42  ;;  %v1041_v26 = vadd.f32 %v2116_v14, %v1040_v23  ;;  %v1148_v33 = vmax.f32 %v1038_v19, 0.0 }
 0x21c   :  { %v1328_v28 = vrot.slane %v1327_v21, 2  ;;  %v1151_v30 = vmax.f32 %v1049_v22, 0.0 }
 0x21d   :  { %v1444_v31 = vsel %vm1426_vm5, %v1310_v24, %v1443_v8  ;;  %v1321_v32 = vrot.slane %v1320_v25, 2  ;;  %v1149_v34 = vmax.f32 %v1041_v26, 0.0 }
 0x21e   :  { %v1329_v35 = vmax.f32 %v1327_v21, %v1328_v28  ;;  %v1445_v36 = vsel %vm1428_vm6, %v1317_v27, %v1444_v31  ;;  %v1339_v37 = vmax.f32 %v1150_v29, %v1151_v30 }
 0x21f   :  { %v1322_v38 = vmax.f32 %v1320_v25, %v1321_v32  ;;  %v1332_v39 = vmax.f32 %v1148_v33, %v1149_v34  ;;  %v1762_v40 = vpop.f32.mrb[48].mxu1 }
 0x220   :  { %v1330_v41 = vrot.slane %v1329_v35, 1  ;;  %v1340_v43 = vrot.slane %v1339_v37, 4  ;;  %v1062_v44 = vadd.f32 %v1762_v40, %v2116_v14  ;;  %v1053_v45 = vpop.f32.mrb[49].mxu1 }
 0x221   :  { %v1323_v46 = vrot.slane %v1322_v38, 1  ;;  %v1333_v47 = vrot.slane %v1332_v39, 4  ;;  %v1054_v48 = vadd.f32 %v2116_v14, %v1053_v45  ;;  %v1763_v49 = vpop.f32.mrb[50].mxu1 }
 0x222   :  { %v1341_v50 = vmax.f32 %v1339_v37, %v1340_v43  ;;  %v1065_v51 = vadd.f32 %v1763_v49, %v2116_v14  ;;  %v1056_v52 = vpop.f32.mrb[51].mxu1  ;;  %v1331_v56 = vmax.f32 %v1329_v35, %v1330_v41  ;;  %v1154_v58 = vmax.f32 %v1062_v44, 0.0 }
 0x223   :  { %v1324_v53 = vmax.f32 %v1322_v38, %v1323_v46  ;;  %v1334_v54 = vmax.f32 %v1332_v39, %v1333_v47  ;;  %v1057_v55 = vadd.f32 %v2116_v14, %v1056_v52  ;;  %v1152_v62 = vmax.f32 %v1054_v48, 0.0 }
 0x224   :  { %v1342_v57 = vrot.slane %v1341_v50, 2  ;;  %v1155_v59 = vmax.f32 %v1065_v51, 0.0 }
 0x225   :  { %v1446_v60 = vsel %vm1430_vm7, %v1324_v53, %v1445_v36  ;;  %v1335_v61 = vrot.slane %v1334_v54, 2  ;;  %v1153_v63 = vmax.f32 %v1057_v55, 0.0 }
 0x226   :  { %v1343_v0 = vmax.f32 %v1341_v50, %v1342_v57  ;;  %v1353_v1 = vmax.f32 %v1154_v58, %v1155_v59  ;;  %v1447_v2 = vsel %vm1432_vm8, %v1331_v56, %v1446_v60 }
 0x227   :  { %v1336_v3 = vmax.f32 %v1334_v54, %v1335_v61  ;;  %v1346_v4 = vmax.f32 %v1152_v62, %v1153_v63  ;;  %v1766_v5 = vpop.f32.mrb[52].mxu1  ;;  %1461 = vst [vmem:[#allocation2 + $0x10] sm:$0xff] %v1447_v2 }
 0x228   :  { %v1344_v6 = vrot.slane %v1343_v0, 1  ;;  %v1354_v7 = vrot.slane %v1353_v1, 4  ;;  %v1078_v8 = vadd.f32 %v1766_v5, %v2116_v14  ;;  %v1069_v9 = vpop.f32.mrb[53].mxu1 }
 0x229   :  { %v1337_v10 = vrot.slane %v1336_v3, 1  ;;  %v1347_v11 = vrot.slane %v1346_v4, 4  ;;  %v1070_v12 = vadd.f32 %v2116_v14, %v1069_v9  ;;  %v1767_v13 = vpop.f32.mrb[54].mxu1 }
 0x22a   :  { %v1345_v15 = vmax.f32 %v1343_v0, %v1344_v6  ;;  %v1355_v16 = vmax.f32 %v1353_v1, %v1354_v7  ;;  %v1081_v17 = vadd.f32 %v1767_v13, %v2116_v14  ;;  %v1072_v18 = vpop.f32.mrb[55].mxu1  ;;  %v1158_v22 = vmax.f32 %v1078_v8, 0.0 }
 0x22b   :  { %v1338_v42 = vmax.f32 %v1336_v3, %v1337_v10  ;;  %v1348_v19 = vmax.f32 %v1346_v4, %v1347_v11  ;;  %v1073_v20 = vadd.f32 %v2116_v14, %v1072_v18  ;;  %v1156_v26 = vmax.f32 %v1070_v12, 0.0 }
 0x22c   :  { %v1356_v21 = vrot.slane %v1355_v16, 2  ;;  %v1159_v23 = vmax.f32 %v1081_v17, 0.0 }
 0x22d   :  { %v1448_v24 = vsel %vm1420_vm2, %v1345_v15, %v1338_v42  ;;  %v1349_v25 = vrot.slane %v1348_v19, 2  ;;  %v1157_v27 = vmax.f32 %v1073_v20, 0.0 }
 0x22e   :  { %v1357_v28 = vmax.f32 %v1355_v16, %v1356_v21  ;;  %v1367_v29 = vmax.f32 %v1158_v22, %v1159_v23 }
 0x22f   :  { %v1350_v30 = vmax.f32 %v1348_v19, %v1349_v25  ;;  %v1360_v31 = vmax.f32 %v1156_v26, %v1157_v27  ;;  %v1770_v32 = vpop.f32.mrb[56].mxu1 }
 0x230   :  { %v1358_v33 = vrot.slane %v1357_v28, 1  ;;  %v1368_v34 = vrot.slane %v1367_v29, 4  ;;  %v1094_v35 = vadd.f32 %v1770_v32, %v2116_v14  ;;  %v1085_v36 = vpop.f32.mrb[57].mxu1 }
 0x231   :  { %v1351_v37 = vrot.slane %v1350_v30, 1  ;;  %v1361_v38 = vrot.slane %v1360_v31, 4  ;;  %v1086_v39 = vadd.f32 %v2116_v14, %v1085_v36  ;;  %v1771_v40 = vpop.f32.mrb[58].mxu1 }
 0x232   :  { %v1369_v41 = vmax.f32 %v1367_v29, %v1368_v34  ;;  %v1097_v43 = vadd.f32 %v1771_v40, %v2116_v14  ;;  %v1088_v44 = vpop.f32.mrb[59].mxu1  ;;  %v1359_v48 = vmax.f32 %v1357_v28, %v1358_v33  ;;  %v1162_v50 = vmax.f32 %v1094_v35, 0.0 }
 0x233   :  { %v1352_v45 = vmax.f32 %v1350_v30, %v1351_v37  ;;  %v1362_v46 = vmax.f32 %v1360_v31, %v1361_v38  ;;  %v1089_v47 = vadd.f32 %v2116_v14, %v1088_v44  ;;  %v1160_v54 = vmax.f32 %v1086_v39, 0.0 }
 0x234   :  { %v1370_v49 = vrot.slane %v1369_v41, 2  ;;  %v1163_v51 = vmax.f32 %v1097_v43, 0.0 }
 0x235   :  { %v1449_v52 = vsel %vm1422_vm3, %v1352_v45, %v1448_v24  ;;  %v1363_v53 = vrot.slane %v1362_v46, 2  ;;  %v1161_v55 = vmax.f32 %v1089_v47, 0.0 }
 0x236   :  { %v1371_v56 = vmax.f32 %v1369_v41, %v1370_v49  ;;  %v1450_v57 = vsel %vm1424_vm4, %v1359_v48, %v1449_v52  ;;  %v1381_v58 = vmax.f32 %v1162_v50, %v1163_v51 }
 0x237   :  { %v1364_v59 = vmax.f32 %v1362_v46, %v1363_v53  ;;  %v1374_v60 = vmax.f32 %v1160_v54, %v1161_v55 }
 0x238   :  { %v1372_v61 = vrot.slane %v1371_v56, 1  ;;  %v1382_v62 = vrot.slane %v1381_v58, 4 }
 0x239   :  { %v1365_v63 = vrot.slane %v1364_v59, 1  ;;  %v1375_v0 = vrot.slane %v1374_v60, 4 }
 0x23a   :  { %v1383_v14 = vmax.f32 %v1381_v58, %v1382_v62  ;;  %v1373_v3 = vmax.f32 %v1371_v56, %v1372_v61 }
 0x23b   :  { %v1366_v1 = vmax.f32 %v1364_v59, %v1365_v63  ;;  %v1376_v2 = vmax.f32 %v1374_v60, %v1375_v0 }
 0x23c   :  { %v1384_v4 = vrot.slane %v1383_v14, 2 }
 0x23d   :  { %v1451_v5 = vsel %vm1426_vm5, %v1366_v1, %v1450_v57  ;;  %v1377_v6 = vrot.slane %v1376_v2, 2 }
 0x23e   :  { %v1385_v7 = vmax.f32 %v1383_v14, %v1384_v4  ;;  %v1452_v8 = vsel %vm1428_vm6, %v1373_v3, %v1451_v5 }
 0x23f   :  { %v1378_v9 = vmax.f32 %v1376_v2, %v1377_v6 }
 0x240   :  { %v1386_v10 = vrot.slane %v1385_v7, 1 }
 0x241   :  { %v1379_v11 = vrot.slane %v1378_v9, 1 }
 0x242   :  { %v1387_v13 = vmax.f32 %v1385_v7, %v1386_v10 }
 0x243   :  { %v1380_v12 = vmax.f32 %v1378_v9, %v1379_v11 }
 0x245   :  { %v1453_v15 = vsel %vm1430_vm7, %v1380_v12, %v1452_v8 }
 0x246   :  { %v1454_v16 = vsel %vm1432_vm8, %v1387_v13, %v1453_v15 }
 0x247   :  { %1462 = vst [vmem:[#allocation2 + $0x18] sm:$0xff] %v1454_v16 }
 0x248   :  { %1843 = shalt.err (!%p1840_p4)
}
 0x249   :  { %s1844_s26 = scalar_lea.hbm %s2227_s5, 512 }
 0x24a   :  { %p1845_p5 = scmp.ne.s32.totalorder %s2227_s5, %s1844_s26  ;;  %p1848_p6 = scmp.lt.u32.totalorder %s1844_s26, %s2227_s5 }
 0x24c   :  { %p1850_p7 = pnand %p1848_p6, %p1845_p5 }
 0x24e   :  { %1853 = shalt.err (!%p1850_p7)
}
 0x24f   :  { %s1857_s6 = smov 128   ;;  %s1858_s7 = smov 8  }
 0x250   :  { %1474 = dma.vmem_to_hbm [thread:$0]  %s1469_s23, 512, %s2227_s5, [#allocation3], %s1857_s6, %s1857_s6, %s1858_s7  }
 0x251   :  { %1854 = dma.done.wait [#allocation3], 512  }
 0x252   :  { %1855 = vsyncadd [#allocation3], 4294966784 }
 0x253   :  { %1478 = vsyncpa [#allocation3], 1 }

</bundles_post_ra>
